<compile_context>
chip_gen: v7x
topology: tpu7x:2x2x1
jax: 0.10.0
libtpu: 0.0.40
codegen_flags: <defaults>
</compile_context>

<pallas_src>
import math

import jax
import jax.numpy as jnp
import numpy as np
from jax.experimental import pallas as pl
from jax.experimental.pallas import tpu as pltpu

# ---------------- problem sizes (small, consistent with the module) ----------
N_BATCH = 2
IN_CHANNELS = 4
IN_LENGTH = 16          # even, so both maxpools divide cleanly
LATENT_DIM = 8

K1, PAD1, C1 = 11, 5, 16
K2, PAD2, C2 = 7, 3, 32
K3, PAD3, C3 = 3, 1, 16          # last_channel_n = 16


def _conv_out(L, k, s, p):
    return (L + 2 * p - k) // s + 1


L1 = _conv_out(IN_LENGTH, K1, 1, PAD1)   # 16
LP1 = _conv_out(L1, 2, 2, 0)             # 8
L2 = _conv_out(LP1, K2, 1, PAD2)         # 8
LP2 = _conv_out(L2, 2, 2, 0)             # 4
L3 = _conv_out(LP2, K3, 1, PAD3)         # 4
FLAT = C3 * L3                           # 64
HID = FLAT // 2                          # 32
HEAD = 2 * LATENT_DIM                    # 16  (mu | log_var fused)
HEAD_PAD = 128                           # lane-dense output width

# batch folded into lanes
NC_IN = N_BATCH * IN_CHANNELS            # 8
NC1 = N_BATCH * C1                       # 32
NC2 = N_BATCH * C2                       # 64
NC3 = N_BATCH * C3                       # 32
NHID = N_BATCH * HID                     # 64

XROWS = IN_LENGTH + 2 * PAD1             # 26  conv1 padded input length
LQ2 = LP1 + 2 * PAD2                     # 14  conv2 padded input length
LQ3 = LP2 + 2 * PAD3                     # 6   conv3 padded input length


def _align8(v):
    return (v + 7) // 8 * 8


# ---- single packed parameter slab: row offsets (all data in lanes [0, width)) ----
T1_OFF = 0                               # conv1 taps: K1 x (NC_IN, NC1) block-diag
T2_OFF = T1_OFF + K1 * NC_IN             # 88   conv2 taps: K2 x (NC1, NC2)
T3_OFF = T2_OFF + K2 * NC1               # 312  conv3 taps: K3 x (NC2, NC3)
P1_OFF = T3_OFF + K3 * NC2               # 504  pool1+pad selector (2*LQ2, L1)
P2_OFF = _align8(P1_OFF + 2 * LQ2)       # 536  pool2+pad selector (2*LQ3, L2)
F1_OFF = _align8(P2_OFF + 2 * LQ3)       # 552  fc1 per-position blocks: L3 x (NC3, NHID)
WH_OFF = F1_OFF + L3 * NC3               # 680  head weights (NHID, HEAD_PAD)
B_OFF = WH_OFF + NHID                    # 744  bias rows: b1,b2,b3,bf1,bhead
SLAB_ROWS = _align8(B_OFF + 5)           # 752
SLAB_COLS = 128


# ----------------------------- Pallas kernel ---------------------------------
def encoder_kernel(x_ref, p_ref, o_ref):
    xp = x_ref[...]                                          # (26, 8)

    b1 = p_ref[B_OFF + 0:B_OFF + 1, 0:NC1]                   # (1, 32)
    b2 = p_ref[B_OFF + 1:B_OFF + 2, 0:NC2]                   # (1, 64)
    b3 = p_ref[B_OFF + 2:B_OFF + 3, 0:NC3]                   # (1, 32)
    bf = p_ref[B_OFF + 3:B_OFF + 4, 0:NHID]                  # (1, 64)
    bh = p_ref[B_OFF + 4:B_OFF + 5, 0:HEAD_PAD]              # (1, 128)

    def conv_relu(h, base, ksize, nci, nco, l_out, bias):
        # conv as a sum of K shifted-tap matmuls (batch block-diagonal in lanes)
        acc = jnp.dot(h[0:l_out, :], p_ref[base:base + nci, 0:nco],
                      preferred_element_type=jnp.float32)
        for k in range(1, ksize):
            acc = acc + jnp.dot(
                h[k:k + l_out, :],
                p_ref[base + nci * k:base + nci * (k + 1), 0:nco],
                preferred_element_type=jnp.float32)
        return jnp.maximum(acc + bias, 0.0)

    def pool_pad(h, base, lpad):
        # extended selector matmul: produces the maxpooled activation ALREADY
        # zero-padded for the next conv (padding rows come out as exact zeros)
        sel = p_ref[base:base + 2 * lpad, 0:h.shape[0]]
        eo = jnp.dot(sel, h, preferred_element_type=jnp.float32)
        return jnp.maximum(eo[0:lpad, :], eo[lpad:2 * lpad, :])

    h = conv_relu(xp, T1_OFF, K1, NC_IN, NC1, L1, b1)        # (16, 32)
    h = pool_pad(h, P1_OFF, LQ2)                             # (14, 32)
    h = conv_relu(h, T2_OFF, K2, NC1, NC2, L2, b2)           # (8, 64)
    h = pool_pad(h, P2_OFF, LQ3)                             # (6, 64)
    h = conv_relu(h, T3_OFF, K3, NC2, NC3, L3, b3)           # (4, 32)

    # fc1 as accumulation over the L3 positions (no flatten concatenation)
    acc = jnp.dot(h[0:1, :], p_ref[F1_OFF:F1_OFF + NC3, 0:NHID],
                  preferred_element_type=jnp.float32)
    for l in range(1, L3):
        acc = acc + jnp.dot(
            h[l:l + 1, :],
            p_ref[F1_OFF + NC3 * l:F1_OFF + NC3 * (l + 1), 0:NHID],
            preferred_element_type=jnp.float32)
    # TODO(synk): both nn.Dropout(0.5) layers are identity in eval mode; no RNG mask applied.
    zz = jax.nn.sigmoid(acc + bf)                            # (1, N*HID)

    # Un-interleave the N lane-blocked samples into N output rows via a masked
    # broadcast feeding one lane-dense fused (mu | log_var) head matmul.
    col = jax.lax.broadcasted_iota(jnp.int32, (N_BATCH, NHID), 1)
    row = jax.lax.broadcasted_iota(jnp.int32, (N_BATCH, NHID), 0)
    keep = (col >= row * HID) & (col < (row + 1) * HID)
    zsel = jnp.where(keep, jnp.broadcast_to(zz, (N_BATCH, NHID)), 0.0)
    wh = p_ref[WH_OFF:WH_OFF + NHID, 0:HEAD_PAD]             # (64, 128)
    o_ref[...] = jnp.dot(zsel, wh, preferred_element_type=jnp.float32) + bh


# ------------------ one-time parameter packing (host side, hoisted) ----------
def pack_params(params):
    (w1, b1, w2, b2, w3, b3, wf1, bf1, wmu, bmu, wlv, blv) = [
        np.asarray(p, np.float32) for p in params]

    slab = np.zeros((SLAB_ROWS, SLAB_COLS), np.float32)

    def bdiag(w):                         # (ci, co) -> (N*ci, N*co) block diagonal
        ci, co = w.shape
        out = np.zeros((N_BATCH * ci, N_BATCH * co), np.float32)
        for n in range(N_BATCH):
            out[n * ci:(n + 1) * ci, n * co:(n + 1) * co] = w
        return out

    def put_conv(base, w):                # torch layout (co, ci, k)
        co, ci, k = w.shape
        for t in range(k):
            slab[base + N_BATCH * ci * t:base + N_BATCH * ci * (t + 1),
                 0:N_BATCH * co] = bdiag(w[:, :, t].T)

    put_conv(T1_OFF, w1)
    put_conv(T2_OFF, w2)
    put_conv(T3_OFF, w3)

    def pool_sel(l_in, pad):
        half = l_in // 2
        lpad = half + 2 * pad
        m = np.zeros((2 * lpad, l_in), np.float32)
        for j in range(half):
            m[pad + j, 2 * j] = 1.0                  # even picks (top half)
            m[lpad + pad + j, 2 * j + 1] = 1.0       # odd picks (bottom half)
        return m

    slab[P1_OFF:P1_OFF + 2 * LQ2, 0:L1] = pool_sel(L1, PAD2)
    slab[P2_OFF:P2_OFF + 2 * LQ3, 0:L2] = pool_sel(L2, PAD3)

    # fc1: torch flat index is c*L3 + l; per-position block Wl[c, h] = wf1[h, c*L3 + l]
    for l in range(L3):
        Wl = wf1[:, l::L3].T                         # (C3, HID)
        slab[F1_OFF + NC3 * l:F1_OFF + NC3 * (l + 1), 0:NHID] = bdiag(Wl)

    wh_pad = np.zeros((HID, HEAD_PAD), np.float32)
    wh_pad[:, 0:LATENT_DIM] = wmu.T
    wh_pad[:, LATENT_DIM:HEAD] = wlv.T
    for n in range(N_BATCH):                         # replicated per lane-block sample
        slab[WH_OFF + n * HID:WH_OFF + (n + 1) * HID, :] = wh_pad

    slab[B_OFF + 0, 0:NC1] = np.tile(b1, N_BATCH)
    slab[B_OFF + 1, 0:NC2] = np.tile(b2, N_BATCH)
    slab[B_OFF + 2, 0:NC3] = np.tile(b3, N_BATCH)
    slab[B_OFF + 3, 0:NHID] = np.tile(bf1, N_BATCH)
    slab[B_OFF + 4, 0:LATENT_DIM] = bmu
    slab[B_OFF + 4, LATENT_DIM:HEAD] = blv

    return jnp.asarray(slab)


# ------------------------------ forward wrapper -------------------------------
_FLOPS = 2 * (L1 * NC_IN * NC1 * K1 + L2 * NC1 * NC2 * K2 + L3 * NC2 * NC3 * K3
              + 2 * LQ2 * L1 * NC1 + 2 * LQ3 * L2 * NC2
              + L3 * NC3 * NHID + N_BATCH * NHID * HEAD_PAD)
_BYTES = 4 * (XROWS * NC_IN + SLAB_ROWS * SLAB_COLS + N_BATCH * HEAD_PAD)


@jax.jit
def encoder_forward(x, param_slab):
    """x: (N, Cin, L) float32; param_slab from pack_params.  Returns (mu, log_var)."""
    # x -> (L, N*Cin), pre-padded for conv1 (only per-call layout work on the data path)
    xt = jnp.transpose(x, (2, 0, 1)).reshape(IN_LENGTH, NC_IN)
    xp = jnp.pad(xt, ((PAD1, PAD1), (0, 0)))

    out = pl.pallas_call(
        encoder_kernel,
        out_shape=jax.ShapeDtypeStruct((N_BATCH, HEAD_PAD), jnp.float32),
        grid=(1,),
        in_specs=[pl.BlockSpec((XROWS, NC_IN), lambda i: (0, 0)),
                  pl.BlockSpec((SLAB_ROWS, SLAB_COLS), lambda i: (0, 0))],
        out_specs=pl.BlockSpec((N_BATCH, HEAD_PAD), lambda i: (0, 0)),
        compiler_params=pltpu.CompilerParams(dimension_semantics=("arbitrary",)),
        cost_estimate=pl.CostEstimate(flops=_FLOPS, transcendentals=NHID,
                                      bytes_accessed=_BYTES),
    )(xp, param_slab)
    return out[:, :LATENT_DIM], out[:, LATENT_DIM:HEAD]


# --------------------------- parameter init (deterministic) ------------------
def init_params(key):
    ks = jax.random.split(key, 12)

    def u(k, shape, fan_in):
        bound = 1.0 / math.sqrt(fan_in)          # PyTorch default-style init
        return jax.random.uniform(k, shape, jnp.float32, -bound, bound)

    w1 = u(ks[0], (C1, IN_CHANNELS, K1), IN_CHANNELS * K1)
    b1 = u(ks[1], (C1,), IN_CHANNELS * K1)
    w2 = u(ks[2], (C2, C1, K2), C1 * K2)
    b2 = u(ks[3], (C2,), C1 * K2)
    w3 = u(ks[4], (C3, C2, K3), C2 * K3)
    b3 = u(ks[5], (C3,), C2 * K3)
    wf1 = u(ks[6], (HID, FLAT), FLAT)
    bf1 = u(ks[7], (HID,), FLAT)
    wmu = u(ks[8], (LATENT_DIM, HID), HID)
    bmu = u(ks[9], (LATENT_DIM,), HID)
    wlv = u(ks[10], (LATENT_DIM, HID), HID)
    blv = u(ks[11], (LATENT_DIM,), HID)
    return (w1, b1, w2, b2, w3, b3, wf1, bf1, wmu, bmu, wlv, blv)


# --------------------------- pure-JAX reference -------------------------------
def ref_forward(x, params):
    (w1, b1, w2, b2, w3, b3, wf1, bf1, wmu, bmu, wlv, blv) = params

    def conv1d(h, w, b, pad):
        N, Ci, L = h.shape
        Co, _, K = w.shape
        hp = jnp.pad(h, ((0, 0), (0, 0), (pad, pad)))
        out = jnp.zeros((N, Co, L), jnp.float32)
        for k in range(K):
            out = out + jnp.einsum('oi,nil->nol', w[:, :, k], hp[:, :, k:k + L])
        return out + b[None, :, None]

    def pool(h):
        N, C, L = h.shape
        return jnp.max(h.reshape(N, C, L // 2, 2), axis=-1)

    h = jax.nn.relu(conv1d(x, w1, b1, PAD1))
    h = pool(h)
    h = jax.nn.relu(conv1d(h, w2, b2, PAD2))
    h = pool(h)
    h = jax.nn.relu(conv1d(h, w3, b3, PAD3))
    flat = h.reshape(h.shape[0], -1)
    z = jax.nn.sigmoid(flat @ wf1.T + bf1)
    return z @ wmu.T + bmu, z @ wlv.T + blv


# ------------------------------------ main ------------------------------------
if __name__ == "__main__":
    key = jax.random.PRNGKey(0)
    k_param, k_x = jax.random.split(key)
    params = init_params(k_param)
    x = jax.random.normal(k_x, (N_BATCH, IN_CHANNELS, IN_LENGTH), jnp.float32)

    param_slab = pack_params(params)       # one-time packing, hoisted off the call path

    mu, log_var = encoder_forward(x, param_slab)
    mu = jax.block_until_ready(mu)
    log_var = jax.block_until_ready(log_var)

    mu_ref, lv_ref = ref_forward(x, params)
    np.testing.assert_allclose(np.asarray(mu), np.asarray(mu_ref), atol=1e-4, rtol=1e-4)
    np.testing.assert_allclose(np.asarray(log_var), np.asarray(lv_ref), atol=1e-4, rtol=1e-4)

    print("KERNEL_OK")
</pallas_src>

<mosaic_0001>
module attributes {stable_mosaic.version = 11 : i64} {
  func.func @encoder_kernel(%arg0: i32, %arg1: memref<26x8xf32, #tpu.memory_space<vmem>>, %arg2: memref<752x128xf32, #tpu.memory_space<vmem>>, %arg3: memref<2x128xf32, #tpu.memory_space<vmem>>) attributes {dimension_semantics = [#tpu.dimension_semantics<arbitrary>], iteration_bounds = array<i64: 1>, scalar_prefetch = 0 : i64, scratch_operands = 0 : i64, tpu.core_type = #tpu.core_type<tc>, window_params = [{pipeline_mode = #tpu.pipeline_mode<synchronous>, transform_indices = @transform_0, window_bounds = array<i64: 26, 8>}, {pipeline_mode = #tpu.pipeline_mode<synchronous>, transform_indices = @transform_1, window_bounds = array<i64: 752, 128>}, {pipeline_mode = #tpu.pipeline_mode<synchronous>, transform_indices = @transform_2, window_bounds = array<i64: 2, 128>}]} {
    %c0 = arith.constant 0 : index
    %c0_0 = arith.constant 0 : index
    %0 = vector.load %arg1[%c0, %c0_0] : memref<26x8xf32, #tpu.memory_space<vmem>>, vector<26x8xf32>
    %c744 = arith.constant 744 : index
    %c0_1 = arith.constant 0 : index
    %1 = vector.load %arg2[%c744, %c0_1] : memref<752x128xf32, #tpu.memory_space<vmem>>, vector<1x32xf32>
    %c745 = arith.constant 745 : index
    %c0_2 = arith.constant 0 : index
    %2 = vector.load %arg2[%c745, %c0_2] : memref<752x128xf32, #tpu.memory_space<vmem>>, vector<1x64xf32>
    %c746 = arith.constant 746 : index
    %c0_3 = arith.constant 0 : index
    %3 = vector.load %arg2[%c746, %c0_3] : memref<752x128xf32, #tpu.memory_space<vmem>>, vector<1x32xf32>
    %c747 = arith.constant 747 : index
    %c0_4 = arith.constant 0 : index
    %4 = vector.load %arg2[%c747, %c0_4] : memref<752x128xf32, #tpu.memory_space<vmem>>, vector<1x64xf32>
    %c748 = arith.constant 748 : index
    %c0_5 = arith.constant 0 : index
    %5 = vector.load %arg2[%c748, %c0_5] : memref<752x128xf32, #tpu.memory_space<vmem>>, vector<1x128xf32>
    %6 = vector.extract_strided_slice %0 {offsets = [0, 0], sizes = [16, 8], strides = [1, 1]} : vector<26x8xf32> to vector<16x8xf32>
    %c0_6 = arith.constant 0 : index
    %c0_7 = arith.constant 0 : index
    %7 = vector.load %arg2[%c0_6, %c0_7] : memref<752x128xf32, #tpu.memory_space<vmem>>, vector<8x32xf32>
    %cst = arith.constant dense<0.000000e+00> : vector<16x32xf32>
    %8 = tpu.matmul %6, %7, %cst {dimension_numbers = #tpu.dot_dimension_numbers<[1], [0], [0], [1], [0, 0, 1, 1], [], []>} : vector<16x8xf32>, vector<8x32xf32>, vector<16x32xf32> -> vector<16x32xf32>
    %9 = vector.extract_strided_slice %0 {offsets = [1, 0], sizes = [16, 8], strides = [1, 1]} : vector<26x8xf32> to vector<16x8xf32>
    %c8 = arith.constant 8 : index
    %c0_8 = arith.constant 0 : index
    %10 = vector.load %arg2[%c8, %c0_8] : memref<752x128xf32, #tpu.memory_space<vmem>>, vector<8x32xf32>
    %cst_9 = arith.constant dense<0.000000e+00> : vector<16x32xf32>
    %11 = tpu.matmul %9, %10, %cst_9 {dimension_numbers = #tpu.dot_dimension_numbers<[1], [0], [0], [1], [0, 0, 1, 1], [], []>} : vector<16x8xf32>, vector<8x32xf32>, vector<16x32xf32> -> vector<16x32xf32>
    %12 = arith.addf %8, %11 : vector<16x32xf32>
    %13 = vector.extract_strided_slice %0 {offsets = [2, 0], sizes = [16, 8], strides = [1, 1]} : vector<26x8xf32> to vector<16x8xf32>
    %c16 = arith.constant 16 : index
    %c0_10 = arith.constant 0 : index
    %14 = vector.load %arg2[%c16, %c0_10] : memref<752x128xf32, #tpu.memory_space<vmem>>, vector<8x32xf32>
    %cst_11 = arith.constant dense<0.000000e+00> : vector<16x32xf32>
    %15 = tpu.matmul %13, %14, %cst_11 {dimension_numbers = #tpu.dot_dimension_numbers<[1], [0], [0], [1], [0, 0, 1, 1], [], []>} : vector<16x8xf32>, vector<8x32xf32>, vector<16x32xf32> -> vector<16x32xf32>
    %16 = arith.addf %12, %15 : vector<16x32xf32>
    %17 = vector.extract_strided_slice %0 {offsets = [3, 0], sizes = [16, 8], strides = [1, 1]} : vector<26x8xf32> to vector<16x8xf32>
    %c24 = arith.constant 24 : index
    %c0_12 = arith.constant 0 : index
    %18 = vector.load %arg2[%c24, %c0_12] : memref<752x128xf32, #tpu.memory_space<vmem>>, vector<8x32xf32>
    %cst_13 = arith.constant dense<0.000000e+00> : vector<16x32xf32>
    %19 = tpu.matmul %17, %18, %cst_13 {dimension_numbers = #tpu.dot_dimension_numbers<[1], [0], [0], [1], [0, 0, 1, 1], [], []>} : vector<16x8xf32>, vector<8x32xf32>, vector<16x32xf32> -> vector<16x32xf32>
    %20 = arith.addf %16, %19 : vector<16x32xf32>
    %21 = vector.extract_strided_slice %0 {offsets = [4, 0], sizes = [16, 8], strides = [1, 1]} : vector<26x8xf32> to vector<16x8xf32>
    %c32 = arith.constant 32 : index
    %c0_14 = arith.constant 0 : index
    %22 = vector.load %arg2[%c32, %c0_14] : memref<752x128xf32, #tpu.memory_space<vmem>>, vector<8x32xf32>
    %cst_15 = arith.constant dense<0.000000e+00> : vector<16x32xf32>
    %23 = tpu.matmul %21, %22, %cst_15 {dimension_numbers = #tpu.dot_dimension_numbers<[1], [0], [0], [1], [0, 0, 1, 1], [], []>} : vector<16x8xf32>, vector<8x32xf32>, vector<16x32xf32> -> vector<16x32xf32>
    %24 = arith.addf %20, %23 : vector<16x32xf32>
    %25 = vector.extract_strided_slice %0 {offsets = [5, 0], sizes = [16, 8], strides = [1, 1]} : vector<26x8xf32> to vector<16x8xf32>
    %c40 = arith.constant 40 : index
    %c0_16 = arith.constant 0 : index
    %26 = vector.load %arg2[%c40, %c0_16] : memref<752x128xf32, #tpu.memory_space<vmem>>, vector<8x32xf32>
    %cst_17 = arith.constant dense<0.000000e+00> : vector<16x32xf32>
    %27 = tpu.matmul %25, %26, %cst_17 {dimension_numbers = #tpu.dot_dimension_numbers<[1], [0], [0], [1], [0, 0, 1, 1], [], []>} : vector<16x8xf32>, vector<8x32xf32>, vector<16x32xf32> -> vector<16x32xf32>
    %28 = arith.addf %24, %27 : vector<16x32xf32>
    %29 = vector.extract_strided_slice %0 {offsets = [6, 0], sizes = [16, 8], strides = [1, 1]} : vector<26x8xf32> to vector<16x8xf32>
    %c48 = arith.constant 48 : index
    %c0_18 = arith.constant 0 : index
    %30 = vector.load %arg2[%c48, %c0_18] : memref<752x128xf32, #tpu.memory_space<vmem>>, vector<8x32xf32>
    %cst_19 = arith.constant dense<0.000000e+00> : vector<16x32xf32>
    %31 = tpu.matmul %29, %30, %cst_19 {dimension_numbers = #tpu.dot_dimension_numbers<[1], [0], [0], [1], [0, 0, 1, 1], [], []>} : vector<16x8xf32>, vector<8x32xf32>, vector<16x32xf32> -> vector<16x32xf32>
    %32 = arith.addf %28, %31 : vector<16x32xf32>
    %33 = vector.extract_strided_slice %0 {offsets = [7, 0], sizes = [16, 8], strides = [1, 1]} : vector<26x8xf32> to vector<16x8xf32>
    %c56 = arith.constant 56 : index
    %c0_20 = arith.constant 0 : index
    %34 = vector.load %arg2[%c56, %c0_20] : memref<752x128xf32, #tpu.memory_space<vmem>>, vector<8x32xf32>
    %cst_21 = arith.constant dense<0.000000e+00> : vector<16x32xf32>
    %35 = tpu.matmul %33, %34, %cst_21 {dimension_numbers = #tpu.dot_dimension_numbers<[1], [0], [0], [1], [0, 0, 1, 1], [], []>} : vector<16x8xf32>, vector<8x32xf32>, vector<16x32xf32> -> vector<16x32xf32>
    %36 = arith.addf %32, %35 : vector<16x32xf32>
    %37 = vector.extract_strided_slice %0 {offsets = [8, 0], sizes = [16, 8], strides = [1, 1]} : vector<26x8xf32> to vector<16x8xf32>
    %c64 = arith.constant 64 : index
    %c0_22 = arith.constant 0 : index
    %38 = vector.load %arg2[%c64, %c0_22] : memref<752x128xf32, #tpu.memory_space<vmem>>, vector<8x32xf32>
    %cst_23 = arith.constant dense<0.000000e+00> : vector<16x32xf32>
    %39 = tpu.matmul %37, %38, %cst_23 {dimension_numbers = #tpu.dot_dimension_numbers<[1], [0], [0], [1], [0, 0, 1, 1], [], []>} : vector<16x8xf32>, vector<8x32xf32>, vector<16x32xf32> -> vector<16x32xf32>
    %40 = arith.addf %36, %39 : vector<16x32xf32>
    %41 = vector.extract_strided_slice %0 {offsets = [9, 0], sizes = [16, 8], strides = [1, 1]} : vector<26x8xf32> to vector<16x8xf32>
    %c72 = arith.constant 72 : index
    %c0_24 = arith.constant 0 : index
    %42 = vector.load %arg2[%c72, %c0_24] : memref<752x128xf32, #tpu.memory_space<vmem>>, vector<8x32xf32>
    %cst_25 = arith.constant dense<0.000000e+00> : vector<16x32xf32>
    %43 = tpu.matmul %41, %42, %cst_25 {dimension_numbers = #tpu.dot_dimension_numbers<[1], [0], [0], [1], [0, 0, 1, 1], [], []>} : vector<16x8xf32>, vector<8x32xf32>, vector<16x32xf32> -> vector<16x32xf32>
    %44 = arith.addf %40, %43 : vector<16x32xf32>
    %45 = vector.extract_strided_slice %0 {offsets = [10, 0], sizes = [16, 8], strides = [1, 1]} : vector<26x8xf32> to vector<16x8xf32>
    %c80 = arith.constant 80 : index
    %c0_26 = arith.constant 0 : index
    %46 = vector.load %arg2[%c80, %c0_26] : memref<752x128xf32, #tpu.memory_space<vmem>>, vector<8x32xf32>
    %cst_27 = arith.constant dense<0.000000e+00> : vector<16x32xf32>
    %47 = tpu.matmul %45, %46, %cst_27 {dimension_numbers = #tpu.dot_dimension_numbers<[1], [0], [0], [1], [0, 0, 1, 1], [], []>} : vector<16x8xf32>, vector<8x32xf32>, vector<16x32xf32> -> vector<16x32xf32>
    %48 = arith.addf %44, %47 : vector<16x32xf32>
    %49 = vector.broadcast %1 : vector<1x32xf32> to vector<16x32xf32>
    %50 = arith.addf %48, %49 : vector<16x32xf32>
    %cst_28 = arith.constant 0.000000e+00 : f32
    %51 = vector.broadcast %cst_28 : f32 to vector<16x32xf32>
    %52 = arith.maximumf %50, %51 : vector<16x32xf32>
    %c504 = arith.constant 504 : index
    %c0_29 = arith.constant 0 : index
    %53 = vector.load %arg2[%c504, %c0_29] : memref<752x128xf32, #tpu.memory_space<vmem>>, vector<28x16xf32>
    %cst_30 = arith.constant dense<0.000000e+00> : vector<28x32xf32>
    %54 = tpu.matmul %53, %52, %cst_30 {dimension_numbers = #tpu.dot_dimension_numbers<[1], [0], [0], [1], [0, 0, 1, 1], [], []>} : vector<28x16xf32>, vector<16x32xf32>, vector<28x32xf32> -> vector<28x32xf32>
    %55 = vector.extract_strided_slice %54 {offsets = [0, 0], sizes = [14, 32], strides = [1, 1]} : vector<28x32xf32> to vector<14x32xf32>
    %56 = vector.extract_strided_slice %54 {offsets = [14, 0], sizes = [14, 32], strides = [1, 1]} : vector<28x32xf32> to vector<14x32xf32>
    %57 = arith.maximumf %55, %56 : vector<14x32xf32>
    %58 = vector.extract_strided_slice %57 {offsets = [0, 0], sizes = [8, 32], strides = [1, 1]} : vector<14x32xf32> to vector<8x32xf32>
    %c88 = arith.constant 88 : index
    %c0_31 = arith.constant 0 : index
    %59 = vector.load %arg2[%c88, %c0_31] : memref<752x128xf32, #tpu.memory_space<vmem>>, vector<32x64xf32>
    %cst_32 = arith.constant dense<0.000000e+00> : vector<8x64xf32>
    %60 = tpu.matmul %58, %59, %cst_32 {dimension_numbers = #tpu.dot_dimension_numbers<[1], [0], [0], [1], [0, 0, 1, 1], [], []>} : vector<8x32xf32>, vector<32x64xf32>, vector<8x64xf32> -> vector<8x64xf32>
    %61 = vector.extract_strided_slice %57 {offsets = [1, 0], sizes = [8, 32], strides = [1, 1]} : vector<14x32xf32> to vector<8x32xf32>
    %c120 = arith.constant 120 : index
    %c0_33 = arith.constant 0 : index
    %62 = vector.load %arg2[%c120, %c0_33] : memref<752x128xf32, #tpu.memory_space<vmem>>, vector<32x64xf32>
    %cst_34 = arith.constant dense<0.000000e+00> : vector<8x64xf32>
    %63 = tpu.matmul %61, %62, %cst_34 {dimension_numbers = #tpu.dot_dimension_numbers<[1], [0], [0], [1], [0, 0, 1, 1], [], []>} : vector<8x32xf32>, vector<32x64xf32>, vector<8x64xf32> -> vector<8x64xf32>
    %64 = arith.addf %60, %63 : vector<8x64xf32>
    %65 = vector.extract_strided_slice %57 {offsets = [2, 0], sizes = [8, 32], strides = [1, 1]} : vector<14x32xf32> to vector<8x32xf32>
    %c152 = arith.constant 152 : index
    %c0_35 = arith.constant 0 : index
    %66 = vector.load %arg2[%c152, %c0_35] : memref<752x128xf32, #tpu.memory_space<vmem>>, vector<32x64xf32>
    %cst_36 = arith.constant dense<0.000000e+00> : vector<8x64xf32>
    %67 = tpu.matmul %65, %66, %cst_36 {dimension_numbers = #tpu.dot_dimension_numbers<[1], [0], [0], [1], [0, 0, 1, 1], [], []>} : vector<8x32xf32>, vector<32x64xf32>, vector<8x64xf32> -> vector<8x64xf32>
    %68 = arith.addf %64, %67 : vector<8x64xf32>
    %69 = vector.extract_strided_slice %57 {offsets = [3, 0], sizes = [8, 32], strides = [1, 1]} : vector<14x32xf32> to vector<8x32xf32>
    %c184 = arith.constant 184 : index
    %c0_37 = arith.constant 0 : index
    %70 = vector.load %arg2[%c184, %c0_37] : memref<752x128xf32, #tpu.memory_space<vmem>>, vector<32x64xf32>
    %cst_38 = arith.constant dense<0.000000e+00> : vector<8x64xf32>
    %71 = tpu.matmul %69, %70, %cst_38 {dimension_numbers = #tpu.dot_dimension_numbers<[1], [0], [0], [1], [0, 0, 1, 1], [], []>} : vector<8x32xf32>, vector<32x64xf32>, vector<8x64xf32> -> vector<8x64xf32>
    %72 = arith.addf %68, %71 : vector<8x64xf32>
    %73 = vector.extract_strided_slice %57 {offsets = [4, 0], sizes = [8, 32], strides = [1, 1]} : vector<14x32xf32> to vector<8x32xf32>
    %c216 = arith.constant 216 : index
    %c0_39 = arith.constant 0 : index
    %74 = vector.load %arg2[%c216, %c0_39] : memref<752x128xf32, #tpu.memory_space<vmem>>, vector<32x64xf32>
    %cst_40 = arith.constant dense<0.000000e+00> : vector<8x64xf32>
    %75 = tpu.matmul %73, %74, %cst_40 {dimension_numbers = #tpu.dot_dimension_numbers<[1], [0], [0], [1], [0, 0, 1, 1], [], []>} : vector<8x32xf32>, vector<32x64xf32>, vector<8x64xf32> -> vector<8x64xf32>
    %76 = arith.addf %72, %75 : vector<8x64xf32>
    %77 = vector.extract_strided_slice %57 {offsets = [5, 0], sizes = [8, 32], strides = [1, 1]} : vector<14x32xf32> to vector<8x32xf32>
    %c248 = arith.constant 248 : index
    %c0_41 = arith.constant 0 : index
    %78 = vector.load %arg2[%c248, %c0_41] : memref<752x128xf32, #tpu.memory_space<vmem>>, vector<32x64xf32>
    %cst_42 = arith.constant dense<0.000000e+00> : vector<8x64xf32>
    %79 = tpu.matmul %77, %78, %cst_42 {dimension_numbers = #tpu.dot_dimension_numbers<[1], [0], [0], [1], [0, 0, 1, 1], [], []>} : vector<8x32xf32>, vector<32x64xf32>, vector<8x64xf32> -> vector<8x64xf32>
    %80 = arith.addf %76, %79 : vector<8x64xf32>
    %81 = vector.extract_strided_slice %57 {offsets = [6, 0], sizes = [8, 32], strides = [1, 1]} : vector<14x32xf32> to vector<8x32xf32>
    %c280 = arith.constant 280 : index
    %c0_43 = arith.constant 0 : index
    %82 = vector.load %arg2[%c280, %c0_43] : memref<752x128xf32, #tpu.memory_space<vmem>>, vector<32x64xf32>
    %cst_44 = arith.constant dense<0.000000e+00> : vector<8x64xf32>
    %83 = tpu.matmul %81, %82, %cst_44 {dimension_numbers = #tpu.dot_dimension_numbers<[1], [0], [0], [1], [0, 0, 1, 1], [], []>} : vector<8x32xf32>, vector<32x64xf32>, vector<8x64xf32> -> vector<8x64xf32>
    %84 = arith.addf %80, %83 : vector<8x64xf32>
    %85 = vector.broadcast %2 : vector<1x64xf32> to vector<8x64xf32>
    %86 = arith.addf %84, %85 : vector<8x64xf32>
    %cst_45 = arith.constant 0.000000e+00 : f32
    %87 = vector.broadcast %cst_45 : f32 to vector<8x64xf32>
    %88 = arith.maximumf %86, %87 : vector<8x64xf32>
    %c536 = arith.constant 536 : index
    %c0_46 = arith.constant 0 : index
    %89 = vector.load %arg2[%c536, %c0_46] : memref<752x128xf32, #tpu.memory_space<vmem>>, vector<12x8xf32>
    %cst_47 = arith.constant dense<0.000000e+00> : vector<12x64xf32>
    %90 = tpu.matmul %89, %88, %cst_47 {dimension_numbers = #tpu.dot_dimension_numbers<[1], [0], [0], [1], [0, 0, 1, 1], [], []>} : vector<12x8xf32>, vector<8x64xf32>, vector<12x64xf32> -> vector<12x64xf32>
    %91 = vector.extract_strided_slice %90 {offsets = [0, 0], sizes = [6, 64], strides = [1, 1]} : vector<12x64xf32> to vector<6x64xf32>
    %92 = vector.extract_strided_slice %90 {offsets = [6, 0], sizes = [6, 64], strides = [1, 1]} : vector<12x64xf32> to vector<6x64xf32>
    %93 = arith.maximumf %91, %92 : vector<6x64xf32>
    %94 = vector.extract_strided_slice %93 {offsets = [0, 0], sizes = [4, 64], strides = [1, 1]} : vector<6x64xf32> to vector<4x64xf32>
    %c312 = arith.constant 312 : index
    %c0_48 = arith.constant 0 : index
    %95 = vector.load %arg2[%c312, %c0_48] : memref<752x128xf32, #tpu.memory_space<vmem>>, vector<64x32xf32>
    %cst_49 = arith.constant dense<0.000000e+00> : vector<4x32xf32>
    %96 = tpu.matmul %94, %95, %cst_49 {dimension_numbers = #tpu.dot_dimension_numbers<[1], [0], [0], [1], [0, 0, 1, 1], [], []>} : vector<4x64xf32>, vector<64x32xf32>, vector<4x32xf32> -> vector<4x32xf32>
    %97 = vector.extract_strided_slice %93 {offsets = [1, 0], sizes = [4, 64], strides = [1, 1]} : vector<6x64xf32> to vector<4x64xf32>
    %c376 = arith.constant 376 : index
    %c0_50 = arith.constant 0 : index
    %98 = vector.load %arg2[%c376, %c0_50] : memref<752x128xf32, #tpu.memory_space<vmem>>, vector<64x32xf32>
    %cst_51 = arith.constant dense<0.000000e+00> : vector<4x32xf32>
    %99 = tpu.matmul %97, %98, %cst_51 {dimension_numbers = #tpu.dot_dimension_numbers<[1], [0], [0], [1], [0, 0, 1, 1], [], []>} : vector<4x64xf32>, vector<64x32xf32>, vector<4x32xf32> -> vector<4x32xf32>
    %100 = arith.addf %96, %99 : vector<4x32xf32>
    %101 = vector.extract_strided_slice %93 {offsets = [2, 0], sizes = [4, 64], strides = [1, 1]} : vector<6x64xf32> to vector<4x64xf32>
    %c440 = arith.constant 440 : index
    %c0_52 = arith.constant 0 : index
    %102 = vector.load %arg2[%c440, %c0_52] : memref<752x128xf32, #tpu.memory_space<vmem>>, vector<64x32xf32>
    %cst_53 = arith.constant dense<0.000000e+00> : vector<4x32xf32>
    %103 = tpu.matmul %101, %102, %cst_53 {dimension_numbers = #tpu.dot_dimension_numbers<[1], [0], [0], [1], [0, 0, 1, 1], [], []>} : vector<4x64xf32>, vector<64x32xf32>, vector<4x32xf32> -> vector<4x32xf32>
    %104 = arith.addf %100, %103 : vector<4x32xf32>
    %105 = vector.broadcast %3 : vector<1x32xf32> to vector<4x32xf32>
    %106 = arith.addf %104, %105 : vector<4x32xf32>
    %cst_54 = arith.constant 0.000000e+00 : f32
    %107 = vector.broadcast %cst_54 : f32 to vector<4x32xf32>
    %108 = arith.maximumf %106, %107 : vector<4x32xf32>
    %109 = vector.extract_strided_slice %108 {offsets = [0, 0], sizes = [1, 32], strides = [1, 1]} : vector<4x32xf32> to vector<1x32xf32>
    %c552 = arith.constant 552 : index
    %c0_55 = arith.constant 0 : index
    %110 = vector.load %arg2[%c552, %c0_55] : memref<752x128xf32, #tpu.memory_space<vmem>>, vector<32x64xf32>
    %cst_56 = arith.constant dense<0.000000e+00> : vector<1x64xf32>
    %111 = tpu.matmul %109, %110, %cst_56 {dimension_numbers = #tpu.dot_dimension_numbers<[1], [0], [0], [1], [0, 0, 1, 1], [], []>} : vector<1x32xf32>, vector<32x64xf32>, vector<1x64xf32> -> vector<1x64xf32>
    %112 = vector.extract_strided_slice %108 {offsets = [1, 0], sizes = [1, 32], strides = [1, 1]} : vector<4x32xf32> to vector<1x32xf32>
    %c584 = arith.constant 584 : index
    %c0_57 = arith.constant 0 : index
    %113 = vector.load %arg2[%c584, %c0_57] : memref<752x128xf32, #tpu.memory_space<vmem>>, vector<32x64xf32>
    %cst_58 = arith.constant dense<0.000000e+00> : vector<1x64xf32>
    %114 = tpu.matmul %112, %113, %cst_58 {dimension_numbers = #tpu.dot_dimension_numbers<[1], [0], [0], [1], [0, 0, 1, 1], [], []>} : vector<1x32xf32>, vector<32x64xf32>, vector<1x64xf32> -> vector<1x64xf32>
    %115 = arith.addf %111, %114 : vector<1x64xf32>
    %116 = vector.extract_strided_slice %108 {offsets = [2, 0], sizes = [1, 32], strides = [1, 1]} : vector<4x32xf32> to vector<1x32xf32>
    %c616 = arith.constant 616 : index
    %c0_59 = arith.constant 0 : index
    %117 = vector.load %arg2[%c616, %c0_59] : memref<752x128xf32, #tpu.memory_space<vmem>>, vector<32x64xf32>
    %cst_60 = arith.constant dense<0.000000e+00> : vector<1x64xf32>
    %118 = tpu.matmul %116, %117, %cst_60 {dimension_numbers = #tpu.dot_dimension_numbers<[1], [0], [0], [1], [0, 0, 1, 1], [], []>} : vector<1x32xf32>, vector<32x64xf32>, vector<1x64xf32> -> vector<1x64xf32>
    %119 = arith.addf %115, %118 : vector<1x64xf32>
    %120 = vector.extract_strided_slice %108 {offsets = [3, 0], sizes = [1, 32], strides = [1, 1]} : vector<4x32xf32> to vector<1x32xf32>
    %c648 = arith.constant 648 : index
    %c0_61 = arith.constant 0 : index
    %121 = vector.load %arg2[%c648, %c0_61] : memref<752x128xf32, #tpu.memory_space<vmem>>, vector<32x64xf32>
    %cst_62 = arith.constant dense<0.000000e+00> : vector<1x64xf32>
    %122 = tpu.matmul %120, %121, %cst_62 {dimension_numbers = #tpu.dot_dimension_numbers<[1], [0], [0], [1], [0, 0, 1, 1], [], []>} : vector<1x32xf32>, vector<32x64xf32>, vector<1x64xf32> -> vector<1x64xf32>
    %123 = arith.addf %119, %122 : vector<1x64xf32>
    %124 = arith.addf %123, %4 : vector<1x64xf32>
    %125 = arith.negf %124 : vector<1x64xf32>
    %126 = math.exp %125 : vector<1x64xf32>
    %cst_63 = arith.constant 1.000000e+00 : f32
    %127 = vector.broadcast %cst_63 : f32 to vector<1x64xf32>
    %128 = arith.addf %127, %126 : vector<1x64xf32>
    %129 = arith.divf %127, %128 : vector<1x64xf32>
    %130 = tpu.iota {dimensions = array<i32: 1>} : vector<2x64xi32>
    %131 = tpu.iota {dimensions = array<i32: 0>} : vector<2x64xi32>
    %c32_i32 = arith.constant 32 : i32
    %132 = vector.broadcast %c32_i32 : i32 to vector<2x64xi32>
    %133 = arith.muli %131, %132 : vector<2x64xi32>
    %134 = arith.cmpi sge, %130, %133 : vector<2x64xi32>
    %c1_i32 = arith.constant 1 : i32
    %135 = vector.broadcast %c1_i32 : i32 to vector<2x64xi32>
    %136 = arith.addi %131, %135 : vector<2x64xi32>
    %c32_i32_64 = arith.constant 32 : i32
    %137 = vector.broadcast %c32_i32_64 : i32 to vector<2x64xi32>
    %138 = arith.muli %136, %137 : vector<2x64xi32>
    %139 = arith.cmpi slt, %130, %138 : vector<2x64xi32>
    %140 = arith.andi %134, %139 : vector<2x64xi1>
    %141 = vector.shape_cast %129 : vector<1x64xf32> to vector<1x64xf32>
    %142 = vector.broadcast %141 : vector<1x64xf32> to vector<2x64xf32>
    %cst_65 = arith.constant 0.000000e+00 : f32
    %143 = vector.broadcast %cst_65 : f32 to vector<2x64xf32>
    %144 = arith.select %140, %142, %143 : vector<2x64xi1>, vector<2x64xf32>
    %c680 = arith.constant 680 : index
    %c0_66 = arith.constant 0 : index
    %145 = vector.load %arg2[%c680, %c0_66] : memref<752x128xf32, #tpu.memory_space<vmem>>, vector<64x128xf32>
    %cst_67 = arith.constant dense<0.000000e+00> : vector<2x128xf32>
    %146 = tpu.matmul %144, %145, %cst_67 {dimension_numbers = #tpu.dot_dimension_numbers<[1], [0], [0], [1], [0, 0, 1, 1], [], []>} : vector<2x64xf32>, vector<64x128xf32>, vector<2x128xf32> -> vector<2x128xf32>
    %147 = vector.broadcast %5 : vector<1x128xf32> to vector<2x128xf32>
    %148 = arith.addf %146, %147 : vector<2x128xf32>
    %c0_68 = arith.constant 0 : index
    %c0_69 = arith.constant 0 : index
    %149 = vector.load %arg3[%c0_68, %c0_69] : memref<2x128xf32, #tpu.memory_space<vmem>>, vector<2x128xf32>
    tpu.vector_store %arg3[%c0_68, %c0_69], %148 {strides = array<i32>} : memref<2x128xf32, #tpu.memory_space<vmem>>, vector<2x128xf32>,
    return
  }
  func.func @transform_0(%arg0: i32) -> (i32, i32) {
    %c0_i32 = arith.constant 0 : i32
    %c0_i32_0 = arith.constant 0 : i32
    %c0_i32_1 = arith.constant 0 : i32
    return %c0_i32, %c0_i32_0 : i32, i32
  }
  func.func @transform_1(%arg0: i32) -> (i32, i32) {
    %c0_i32 = arith.constant 0 : i32
    %c0_i32_0 = arith.constant 0 : i32
    %c0_i32_1 = arith.constant 0 : i32
    return %c0_i32, %c0_i32_0 : i32, i32
  }
  func.func @transform_2(%arg0: i32) -> (i32, i32) {
    %c0_i32 = arith.constant 0 : i32
    %c0_i32_0 = arith.constant 0 : i32
    %c0_i32_1 = arith.constant 0 : i32
    return %c0_i32, %c0_i32_0 : i32, i32
  }
}

</mosaic_0001>

<bundles_post_ra>
// kernel: encoder_forward.1
= control target key start
LH: loop header
LB: loop body
LE: loop exit
PB: predicated region body
PF: predicated region fallthrough
CT: control target
= control target key end

     0   :  { %7 = vsyncpa [#allocation3], 0  ;;  %s3047_s9 = smov [#allocation2]   ;;  %s3276_s0 = inlined_call_operand.vmem [shape: f32[26,8], index: 0, kind: input, shape index: {}]   ;;  %s3277_s1 = inlined_call_operand.hbm [shape: f32[752,128], index: 1, kind: input, shape index: {}]   ;;  %s3278_s2 = inlined_call_operand.vmem [shape: f32[2,128], index: 2, kind: output, shape index: {}]  }
   0x1   :  { %s15_s10 = sshll.u32 %s3047_s9, 4  ;;  %s3023_s13 = scalar_lea.hbm %s3277_s1, 12032  ;;  %s16_s10 = int_to_ptr.vmem [resolvable:$true] %s15_s10 }
   0x2   :  { %p3024_p0 = scmp.ne.s32.totalorder %s3277_s1, %s3023_s13  ;;  %p3027_p1 = scmp.lt.u32.totalorder %s3023_s13, %s3277_s1 }
   0x4   :  { %p3029_p2 = pnand %p3027_p1, %p3024_p0 }
   0x6   :  { %3032 = shalt.err (!%p3029_p2)
}
   0x7   :  { %s3033_s18 = scalar_lea.vmem %s16_s10, 12032  ;;  %p3038_p4 = scmp.lt.s32.totalorder %s16_s10, %s16_s10 }
   0x8   :  { %p3034_p3 = scmp.ne.s32.totalorder %s16_s10, %s3033_s18  ;;  %p3039_p5 = scmp.lt.s32.totalorder %s3033_s18, %s3033_s18 }
   0xa   :  { %p3040_p6 = por %p3039_p5, %p3038_p4 }
   0xc   :  { %p3041_p7 = pnand %p3040_p6, %p3034_p3 }
   0xe   :  { %3044 = shalt.err (!%p3041_p7)
}
   0xf   :  { %s3048_s19 = smov 128   ;;  %s3049_s20 = smov 8  }
  0x10   :  { %21 = dma.hbm_to_vmem [thread:$0]  %s3277_s1, 12032, %s16_s10, [#allocation3], %s3048_s19, %s3048_s19, %s3049_s20  }
  0x11   :  { %3045 = dma.done.wait [#allocation3], 12032  }
  0x12   :  { %3046 = vsyncadd [#allocation3], 4294955264  ;;  %v35_v0 = vld [vmem:[#allocation2 + $0x8] sm:$0xff]  ;;  %v3083_v1 = vld [vmem:[%s3276_s0] sm:$0xff]  ;;  %vm39_vm0 = vcmask 1046528   ;;  %vm45_vm1 = vcmask 64512  }
  0x13   :  { %v3088_v2 = vld [vmem:[%s3276_s0 + $0x8] sm:$0xff]  ;;  %2608 = vmatprep.subr.mxu0 %v35_v0  ;;  %v40_v3 = vrot.slane %v3083_v1, 1  ;;  %v3095_v5 = vld [vmem:[%s3276_s0 + $0x10] sm:$0xff]  ;;  %v34_v6 = vld [vmem:[#allocation2] sm:$0xff]  ;;  %v206_v11 = vrot.slane %v3083_v1, 2  ;;  %vm205_vm2 = vcmask 1045504  }
  0x14   :  { %v41_v4 = vrot.slane %v3088_v2, 1  ;;  %2609 = vmatpush3.msra.mxu0 %v35_v0  ;;  %v43_v7 = vrot.slane %v3095_v5, 1  ;;  %v204_v10 = vld [vmem:[#allocation2 + $0x10] sm:$0xff]  ;;  %v207_v12 = vrot.slane %v3088_v2, 2  ;;  %v292_v14 = vld [vmem:[#allocation2 + $0x18] sm:$0xff]  ;;  %v209_v15 = vrot.slane %v3095_v5, 2 }
  0x15   :  { %2613 = vmatprep.subr.mxu0 %v34_v6  ;;  %v294_v16 = vrot.slane %v3083_v1, 3  ;;  %v295_v17 = vrot.slane %v3088_v2, 3  ;;  %vm293_vm3 = vcmask 1044480   ;;  %v380_v20 = vld [vmem:[#allocation2 + $0x20] sm:$0xff]  ;;  %v297_v21 = vrot.slane %v3095_v5, 3  ;;  %v468_v26 = vld [vmem:[#allocation2 + $0x28] sm:$0xff] }
  0x16   :  { %v42_v8 = vsel %vm39_vm0, %v40_v3, %v41_v4  ;;  %v3103_v9 = vsel %vm39_vm0, %v41_v4, %v43_v7  ;;  %v208_v13 = vsel %vm205_vm2, %v206_v11, %v207_v12  ;;  %v3121_v18 = vsel %vm205_vm2, %v207_v12, %v209_v15  ;;  %v556_v32 = vld [vmem:[#allocation2 + $0x30] sm:$0xff]  ;;  %v644_v38 = vld [vmem:[#allocation2 + $0x38] sm:$0xff]  ;;  %v732_v44 = vld [vmem:[#allocation2 + $0x40] sm:$0xff] }
  0x17   :  { %2610 = vmatprep.mubr.msk.f32.mxu0 %vm45_vm1, %v42_v8  ;;  %v296_v19 = vsel %vm293_vm3, %v294_v16, %v295_v17  ;;  %v382_v22 = vrot.slane %v3083_v1, 4  ;;  %v383_v23 = vrot.slane %v3088_v2, 4  ;;  %vm381_vm4 = vcmask 1043456   ;;  %v812_v47 = vld [vmem:[#allocation2 + $0x48] sm:$0xff]  ;;  %v28_v48 = vld [vmem:[%s3276_s0 + $0x18] sm:$0x3] }
  0x18   :  { %2611 = vmatmul.mubr.msk.f32.vlgmr.msra.gmra.mrb[0].mxu0 %vm45_vm1, %v3103_v9  ;;  %v298_v24 = vsel %vm293_vm3, %v295_v17, %v297_v21  ;;  %v385_v27 = vrot.slane %v3095_v5, 4  ;;  %v470_v28 = vrot.slane %v3083_v1, 5  ;;  %v471_v29 = vrot.slane %v3088_v2, 5  ;;  %v895_v49 = vld [vmem:[#allocation2 + $0x50] sm:$0xff]  ;;  %v985_v54 = vld [vmem:[#allocation2 + $0x1f8] sm:$0xff]  ;;  %v986_v63 = vld [vmem:[#allocation2 + $0x200] sm:$0xff] }
  0x19   :  { %2614 = vmatpush3.msra.mxu0 %v34_v6  ;;  %2615 = vmatprep.mubr.msk.f32.mxu0 %vm45_vm1, %v3083_v1  ;;  %v384_v25 = vsel %vm381_vm4, %v382_v22, %v383_v23  ;;  %vm469_vm5 = vcmask 1042432   ;;  %v473_v33 = vrot.slane %v3095_v5, 5  ;;  %v558_v34 = vrot.slane %v3083_v1, 6  ;;  %v2449_v55 = vld [vmem:[#allocation2 + $0x2e8] ss:$0 sm:$0xff]  ;;  %v1100_v3 = vld [vmem:[#allocation2 + $0x60] sm:$0xff] }
  0x1a   :  { %2618 = vmatprep.subr.mxu0 %v204_v10  ;;  %v386_v30 = vsel %vm381_vm4, %v383_v23, %v385_v27  ;;  %v472_v31 = vsel %vm469_vm5, %v470_v28, %v471_v29  ;;  %v559_v35 = vrot.slane %v3088_v2, 6  ;;  %vm557_vm6 = vcmask 1041408   ;;  %v987_v0 = vld [vmem:[#allocation2 + $0x208] sm:$0xff]  ;;  %v1103_v6 = vld [vmem:[#allocation2 + $0x78] sm:$0xff]  ;;  %v1258_v22 = vld [vmem:[#allocation2 + $0xa0] sm:$0xff] }
  0x1b   :  { %v474_v36 = vsel %vm469_vm5, %v471_v29, %v473_v33  ;;  %v561_v39 = vrot.slane %v3095_v5, 6  ;;  %v646_v40 = vrot.slane %v3083_v1, 7  ;;  %v647_v41 = vrot.slane %v3088_v2, 7  ;;  %v988_v1 = vld [vmem:[#allocation2 + $0x210] sm:$0xf]  ;;  %v1105_v12 = vld [vmem:[#allocation2 + $0x88] sm:$0xff] }
  0x1c   :  { %v560_v37 = vsel %vm557_vm6, %v558_v34, %v559_v35  ;;  %vm645_vm7 = vcmask 1040384   ;;  %v649_v45 = vrot.slane %v3095_v5, 7  ;;  %v814_v50 = vrot.slane %v28_v48, 1  ;;  %v1257_v21 = vld [vmem:[#allocation2 + $0x98] sm:$0xff]  ;;  %v1259_v27 = vld [vmem:[#allocation2 + $0xa8] sm:$0xff]  ;;  %v1260_v28 = vld [vmem:[#allocation2 + $0xb0] sm:$0xff] }
  0x1d   :  { %v562_v42 = vsel %vm557_vm6, %v559_v35, %v561_v39  ;;  %v648_v43 = vsel %vm645_vm7, %v646_v40, %v647_v41  ;;  %v896_v52 = vrot.slane %v28_v48, 2  ;;  %vm989_vm8 = vcmask 130048   ;;  %v1499_v40 = vld [vmem:[#allocation2 + $0x108] sm:$0xff]  ;;  %v1337_v48 = vld [vmem:[#allocation2 + $0xb8] sm:$0xff] }
  0x1e   :  { %v650_v46 = vsel %vm645_vm7, %v647_v41, %v649_v45  ;;  %v815_v51 = vsel %vm39_vm0, %v43_v7, %v814_v50  ;;  %2667 = vmatprep.mubr.msk.f32.mxu1 %vm989_vm8, %v985_v54  ;;  %v1104_v7 = vld [vmem:[#allocation2 + $0x80] sm:$0xff]  ;;  %vm3051_vm9 = vmmov 0   ;;  %vm1112_vm10 = vcmask 261120   ;;  %v1500_v41 = vld [vmem:[#allocation2 + $0x110] sm:$0xff] }
  0x1f   :  { %v897_v53 = vsel %vm205_vm2, %v209_v15, %v896_v52  ;;  %v2880_v8 = vpack.c.bf16 %v1104_v7, %v1103_v6  ;;  %v3052_v15 = vmov 0.0   ;;  %v2895_v35 = vpack.c.bf16 %v1260_v28, %v1259_v27  ;;  %v1577_v6 = vld [vmem:[#allocation2 + $0x118] sm:$0xff]  ;;  %v1578_v7 = vld [vmem:[#allocation2 + $0x120] sm:$0xff] }
  0x20   :  { %2616 = vmatmul.mubr.msk.f32.vlgmr.msra.gmra.mrb[0].mxu0 %vm45_vm1, %v3088_v2  ;;  %vm1771_vm11 = vcmask 523264  }
  0x21   :  { %2619 = vmatpush3.msra.mxu0 %v204_v10  ;;  %2620 = vmatprep.mubr.msk.f32.mxu0 %vm45_vm1, %v208_v13  ;;  %v1102_v10 = vld [vmem:[#allocation2 + $0x70] sm:$0xff] }
  0x22   :  { %2623 = vmatprep.subr.mxu0 %v292_v14  ;;  %v1106_v13 = vld [vmem:[#allocation2 + $0x90] sm:$0xff] }
  0x28   :  { %2621 = vmatmul.mubr.msk.f32.vlgmr.msra.gmra.mrb[0].mxu0 %vm45_vm1, %v3121_v18 }
  0x29   :  { %2624 = vmatpush3.msra.mxu0 %v292_v14  ;;  %2625 = vmatprep.mubr.msk.f32.mxu0 %vm45_vm1, %v296_v19  ;;  %v2883_v14 = vpack.c.bf16 %v1106_v13, %v1105_v12  ;;  %v1663_v12 = vld [vmem:[#allocation2 + $0x218] sm:$0xff] }
  0x2a   :  { %2628 = vmatprep.subr.mxu0 %v380_v20  ;;  %v1761_v13 = vld [vmem:[#allocation2 + $0x178] sm:$0xff] }
  0x30   :  { %2626 = vmatmul.mubr.msk.f32.vlgmr.msra.gmra.mrb[0].mxu0 %vm45_vm1, %v298_v24 }
  0x31   :  { %2629 = vmatpush3.msra.mxu0 %v380_v20  ;;  %2630 = vmatprep.mubr.msk.f32.mxu0 %vm45_vm1, %v384_v25  ;;  %v1497_v25 = vld [vmem:[#allocation2 + $0xf8] sm:$0xff] }
  0x32   :  { %2633 = vmatprep.subr.mxu0 %v468_v26 }
  0x38   :  { %2631 = vmatmul.mubr.msk.f32.vlgmr.msra.gmra.mrb[0].mxu0 %vm45_vm1, %v386_v30 }
  0x39   :  { %2634 = vmatpush3.msra.mxu0 %v468_v26  ;;  %2635 = vmatprep.mubr.msk.f32.mxu0 %vm45_vm1, %v472_v31  ;;  %v1498_v26 = vld [vmem:[#allocation2 + $0x100] sm:$0xff]  ;;  %v2892_v31 = vpack.c.bf16 %v1258_v22, %v1257_v21 }
  0x3a   :  { %2638 = vmatprep.subr.mxu0 %v556_v32  ;;  %v2910_v34 = vpack.c.bf16 %v1498_v26, %v1497_v25 }
  0x40   :  { %2636 = vmatmul.mubr.msk.f32.vlgmr.msra.gmra.mrb[0].mxu0 %vm45_vm1, %v474_v36 }
  0x41   :  { %2639 = vmatpush3.msra.mxu0 %v556_v32  ;;  %2640 = vmatprep.mubr.msk.f32.mxu0 %vm45_vm1, %v560_v37 }
  0x42   :  { %2643 = vmatprep.subr.mxu0 %v644_v38 }
  0x48   :  { %2641 = vmatmul.mubr.msk.f32.vlgmr.msra.gmra.mrb[0].mxu0 %vm45_vm1, %v562_v42 }
  0x49   :  { %2644 = vmatpush3.msra.mxu0 %v644_v38  ;;  %2645 = vmatprep.mubr.msk.f32.mxu0 %vm45_vm1, %v648_v43 }
  0x4a   :  { %2648 = vmatprep.subr.mxu0 %v732_v44 }
  0x50   :  { %2646 = vmatmul.mubr.msk.f32.vlgmr.msra.gmra.mrb[0].mxu0 %vm45_vm1, %v650_v46 }
  0x51   :  { %2649 = vmatpush3.msra.mxu0 %v732_v44  ;;  %2650 = vmatprep.mubr.msk.f32.mxu0 %vm45_vm1, %v3088_v2  ;;  %v1099_v2 = vld [vmem:[#allocation2 + $0x58] sm:$0xff] }
  0x52   :  { %2653 = vmatprep.subr.mxu0 %v812_v47  ;;  %v2886_v4 = vpack.c.bf16 %v1100_v3, %v1099_v2  ;;  %v1419_v2 = vld [vmem:[#allocation2 + $0xe8] sm:$0xff]  ;;  %v1420_v3 = vld [vmem:[#allocation2 + $0xf0] sm:$0xff] }
  0x58   :  { %2651 = vmatmul.mubr.msk.f32.vlgmr.msra.gmra.mrb[0].mxu0 %vm45_vm1, %v3095_v5  ;;  %v3050_v5 = vmov 0.0|0.0  }
  0x59   :  { %2654 = vmatpush3.msra.mxu0 %v812_v47  ;;  %2655 = vmatprep.mubr.msk.f32.mxu0 %vm45_vm1, %v3103_v9  ;;  %v1101_v9 = vld [vmem:[#allocation2 + $0x68] sm:$0xff] }
  0x5a   :  { %2658 = vmatprep.subr.mxu0 %v895_v49  ;;  %v2889_v11 = vpack.c.bf16 %v1102_v10, %v1101_v9  ;;  %v1579_v9 = vld [vmem:[#allocation2 + $0x128] sm:$0xff]  ;;  %v1580_v10 = vld [vmem:[#allocation2 + $0x130] sm:$0xff] }
  0x60   :  { %2656 = vmatmul.mubr.msk.f32.vlgmr.msra.gmra.mrb[0].mxu0 %vm45_vm1, %v815_v51 }
  0x61   :  { %2659 = vmatpush3.msra.mxu0 %v895_v49  ;;  %2660 = vmatprep.mubr.msk.f32.mxu0 %vm45_vm1, %v3121_v18  ;;  %v1338_v49 = vld [vmem:[#allocation2 + $0xc0] sm:$0xff] }
  0x62   :  { %2879 = vmatprep.subr.bf16.mxu0 %v3050_v5 }
  0x68   :  { %2661 = vmatmul.mubr.msk.f32.vlgmr.msra.gmra.mrb[0].mxu0 %vm45_vm1, %v897_v53 }
  0x69   :  { %2881 = vmatpush3.bf16.msra.mxu0 %v2880_v8  ;;  %2681 = vmatprep.mubr.msk.f32.mxu0 %vm3051_vm9, %v3052_v15  ;;  %v2916_v8 = vpack.c.bf16 %v1578_v7, %v1577_v6 }
  0x6a   :  { %2882 = vmatprep.subr.bf16.mxu0 %v3050_v5 }
  0x6d   :  { %2884 = vmatpush3.bf16.msra.mxu0 %v2883_v14  ;;  %v1762_v14 = vld [vmem:[#allocation2 + $0x180] sm:$0xff] }
  0x6e   :  { %2909 = vmatprep.subr.bf16.mxu0 %v3050_v5 }
 0x13b   :  { %v2662_v56 = vpop.f32.mrb[0].mxu0 }
 0x13c   :  { %v982_v57 = vadd.f32 %v2662_v56, %v2449_v55  ;;  %v966_v58 = vpop.f32.mrb[1].mxu0  ;;  %v2913_v56 = vpack.c.bf16 %v1500_v41, %v1499_v40 }
 0x13d   :  { %v981_v59 = vadd.f32 %v2449_v55, %v966_v58  ;;  %v2898_v58 = vpack.c.bf16 %v1338_v49, %v1337_v48  ;;  %v1756_v48 = vld [vmem:[#allocation2 + $0x150] sm:$0xff] }
 0x13e   :  { %v984_v60 = vmax.f32 %v982_v57, 0.0 }
 0x13f   :  { %v983_v61 = vmax.f32 %v981_v59, 0.0 }
 0x141   :  { %v2875_v62 = vpack.c.bf16 %v984_v60, %v983_v61  ;;  %v1339_v60 = vld [vmem:[#allocation2 + $0xc8] sm:$0xff]  ;;  %v1340_v61 = vld [vmem:[#allocation2 + $0xd0] sm:$0xff] }
 0x143   :  { %2876 = vmatprep.subr.bf16.mxu1 %v2875_v62 }
 0x144   :  { %2878 = vmatpush3.bf16.msra.mxu1 %v2875_v62  ;;  %v2901_v62 = vpack.c.bf16 %v1340_v61, %v1339_v60  ;;  %v1768_v60 = vld [vmem:[#allocation2 + $0x1b0] sm:$0xff] }
 0x145   :  { %2885 = vmatprep.subr.bf16.mxu1 %v3050_v5 }
 0x147   :  { %2668 = vmatmul.mubr.msk.f32.vlgmr.msra.gmra.mrb[0].mxu1 %vm989_vm8, %v986_v63  ;;  %v1417_v63 = vld [vmem:[#allocation2 + $0xd8] sm:$0xff] }
 0x148   :  { %2670 = vmatprep.mubr.msk.f32.mxu1 %vm989_vm8, %v987_v0  ;;  %2887 = vmatpush3.bf16.msra.mxu1 %v2886_v4  ;;  %v1418_v0 = vld [vmem:[#allocation2 + $0xe0] sm:$0xff]  ;;  %v2907_v4 = vpack.c.bf16 %v1420_v3, %v1419_v2  ;;  %v1916_v2 = vld [vmem:[#allocation2 + $0x1b8] sm:$0xff] }
 0x149   :  { %2888 = vmatprep.subr.bf16.mxu1 %v3050_v5  ;;  %v1917_v3 = vld [vmem:[#allocation2 + $0x1c0] sm:$0xff] }
 0x14a   :  { %v2946_v7 = vpack.c.bf16 %v1917_v3, %v1916_v2  ;;  %v2343_v3 = vld [vmem:[#allocation2 + $0x2e0] sm:$0xff] }
 0x14b   :  { %2671 = vmatmul.mubr.msk.f32.gmra.mrb[2].mxu1 %vm989_vm8, %v988_v1  ;;  %v2904_v1 = vpack.c.bf16 %v1418_v0, %v1417_v63 }
 0x14c   :  { %2890 = vmatpush3.bf16.msra.mxu1 %v2889_v11  ;;  %2692 = vmatprep.mubr.msk.f32.mxu1 %vm3051_vm9, %v3052_v15  ;;  %v2919_v11 = vpack.c.bf16 %v1580_v10, %v1579_v9  ;;  %v1918_v9 = vld [vmem:[#allocation2 + $0x1c8] sm:$0xff]  ;;  %v1919_v10 = vld [vmem:[#allocation2 + $0x1d0] sm:$0xff] }
 0x14d   :  { %2891 = vmatprep.subr.bf16.mxu1 %v3050_v5 }
 0x21a   :  { %v2669_v16 = vpop.f32.mrb[0].mxu1 }
 0x21b   :  { %v1068_v17 = vpop.f32.mrb[1].mxu1  ;;  %v1090_v23 = vrot.slane %v2669_v16, 6 }
 0x21e   :  { %v2672_v18 = vpop.f32.mrb[2].mxu1 }
 0x21f   :  { %v1093_v19 = vrot.slane %v2672_v18, 6  ;;  %v1078_v20 = vpop.f32.mrb[3].mxu1  ;;  %v1764_v18 = vld [vmem:[#allocation2 + $0x190] sm:$0xff] }
 0x220   :  { %v1091_v24 = vrot.slane %v1078_v20, 6 }
 0x222   :  { %v1092_v29 = vsel %vm557_vm6, %v1090_v23, %v1091_v24  ;;  %v1094_v30 = vsel %vm557_vm6, %v1091_v24, %v1093_v19 }
 0x223   :  { %v1097_v32 = vmax.f32 %v1068_v17, %v1092_v29  ;;  %v1098_v33 = vmax.f32 %v2669_v16, %v1094_v30  ;;  %v2922_v16 = vpack.c.bf16 %v1762_v14, %v1761_v13  ;;  %v1763_v17 = vld [vmem:[#allocation2 + $0x188] sm:$0xff]  ;;  %v1921_v13 = vld [vmem:[#allocation2 + $0x1e0] sm:$0xff] }
 0x224   :  { %v2925_v19 = vpack.c.bf16 %v1764_v18, %v1763_v17  ;;  %v1923_v17 = vld [vmem:[#allocation2 + $0x1f0] sm:$0xff] }
 0x225   :  { %2693 = vmatmul.mubr.msk.f32.vlgmr.msra.gmra.mrb[4].mxu1 %vm1112_vm10, %v1097_v32  ;;  %v1109_v36 = vrot.slane %v1097_v32, 1  ;;  %v1110_v37 = vrot.slane %v1098_v33, 1  ;;  %v1261_v38 = vrot.slane %v1097_v32, 2  ;;  %v1262_v39 = vrot.slane %v1098_v33, 2 }
 0x226   :  { %2893 = vmatpush3.bf16.msra.mxu1 %v2892_v31  ;;  %2703 = vmatprep.mubr.msk.f32.mxu1 %vm3051_vm9, %v3052_v15  ;;  %v1501_v42 = vrot.slane %v1097_v32, 5  ;;  %v1502_v43 = vrot.slane %v1098_v33, 5  ;;  %v1341_v44 = vrot.slane %v1097_v32, 3  ;;  %v1342_v45 = vrot.slane %v1098_v33, 3 }
 0x227   :  { %v1111_v46 = vsel %vm39_vm0, %v1109_v36, %v1110_v37  ;;  %2894 = vmatprep.subr.bf16.mxu1 %v3050_v5  ;;  %v1263_v47 = vsel %vm205_vm2, %v1261_v38, %v1262_v39  ;;  %v1421_v50 = vrot.slane %v1097_v32, 4  ;;  %v1422_v51 = vrot.slane %v1098_v33, 4  ;;  %v2461_v37 = vld [vmem:[#allocation2 + $0x2e9] ss:$0 sm:$0xff] }
 0x228   :  { %2682 = vmatmul.mubr.msk.f32.vlgmr.msra.gmra.mrb[2].mxu0 %vm1112_vm10, %v1111_v46  ;;  %v1503_v52 = vsel %vm469_vm5, %v1501_v42, %v1502_v43  ;;  %v1343_v53 = vsel %vm293_vm3, %v1341_v44, %v1342_v45  ;;  %v1581_v54 = vrot.slane %v1097_v32, 6  ;;  %v1582_v55 = vrot.slane %v1098_v33, 6  ;;  %v1753_v42 = vld [vmem:[#allocation2 + $0x138] sm:$0xff]  ;;  %v1754_v43 = vld [vmem:[#allocation2 + $0x140] sm:$0xff] }
 0x229   :  { %2911 = vmatpush3.bf16.msra.mxu0 %v2910_v34  ;;  %2736 = vmatprep.mubr.msk.f32.mxu0 %vm3051_vm9, %v3052_v15  ;;  %v1423_v57 = vsel %vm381_vm4, %v1421_v50, %v1422_v51  ;;  %v1664_v45 = vld [vmem:[#allocation2 + $0x220] sm:$0xf]  ;;  %v2934_v46 = vpack.c.bf16 %v1754_v43, %v1753_v42  ;;  %v1757_v50 = vld [vmem:[#allocation2 + $0x158] sm:$0xff]  ;;  %v2004_v42 = vld [vmem:[#allocation2 + $0x228] sm:$0xff] }
 0x22a   :  { %2896 = vmatpush3.bf16.msra.mxu1 %v2895_v35  ;;  %2912 = vmatprep.subr.bf16.mxu0 %v3050_v5  ;;  %v1583_v59 = vsel %vm557_vm6, %v1581_v54, %v1582_v55  ;;  %v1758_v51 = vld [vmem:[#allocation2 + $0x160] sm:$0xff]  ;;  %v2005_v43 = vld [vmem:[#allocation2 + $0x230] sm:$0xff] }
 0x22b   :  { %2897 = vmatprep.subr.bf16.mxu1 %v3050_v5  ;;  %v1766_v54 = vld [vmem:[#allocation2 + $0x1a0] sm:$0xff] }
 0x22d   :  { %2704 = vmatmul.mubr.msk.f32.vlgmr.msra.gmra.mrb[6].mxu1 %vm1112_vm10, %v1263_v47  ;;  %2914 = vmatpush3.bf16.msra.mxu0 %v2913_v56  ;;  %v1755_v47 = vld [vmem:[#allocation2 + $0x148] sm:$0xff] }
 0x22e   :  { %2899 = vmatpush3.bf16.msra.mxu1 %v2898_v58  ;;  %2714 = vmatprep.mubr.msk.f32.mxu1 %vm3051_vm9, %v3052_v15  ;;  %v2937_v49 = vpack.c.bf16 %v1756_v48, %v1755_v47  ;;  %v1759_v56 = vld [vmem:[#allocation2 + $0x168] sm:$0xff]  ;;  %v2006_v48 = vld [vmem:[#allocation2 + $0x238] sm:$0xff] }
 0x22f   :  { %2900 = vmatprep.subr.bf16.mxu1 %v3050_v5 }
 0x230   :  { %2737 = vmatmul.mubr.msk.f32.vlgmr.msra.gmra.mrb[4].mxu0 %vm1112_vm10, %v1503_v52  ;;  %v2940_v52 = vpack.c.bf16 %v1758_v51, %v1757_v50  ;;  %v2236_v51 = vld [vmem:[#allocation2 + $0x288] sm:$0xff] }
 0x231   :  { %2752 = vmatprep.mubr.msk.f32.mxu0 %vm45_vm1, %v1663_v12  ;;  %v1920_v12 = vld [vmem:[#allocation2 + $0x1d8] sm:$0xff] }
 0x232   :  { %2902 = vmatpush3.bf16.msra.mxu1 %v2901_v62  ;;  %v2952_v14 = vpack.c.bf16 %v1921_v13, %v1920_v12 }
 0x233   :  { %2903 = vmatprep.subr.bf16.mxu1 %v3050_v5 }
 0x235   :  { %2715 = vmatmul.mubr.msk.f32.vlgmr.msra.gmra.mrb[8].mxu1 %vm1112_vm10, %v1343_v53  ;;  %v1765_v53 = vld [vmem:[#allocation2 + $0x198] sm:$0xff] }
 0x236   :  { %2905 = vmatpush3.bf16.msra.mxu1 %v2904_v1  ;;  %2725 = vmatprep.mubr.msk.f32.mxu1 %vm3051_vm9, %v3052_v15  ;;  %v2928_v55 = vpack.c.bf16 %v1766_v54, %v1765_v53  ;;  %v2238_v54 = vld [vmem:[#allocation2 + $0x298] sm:$0xff] }
 0x237   :  { %2906 = vmatprep.subr.bf16.mxu1 %v3050_v5 }
 0x23a   :  { %2908 = vmatpush3.bf16.msra.mxu1 %v2907_v4 }
 0x23b   :  { %2915 = vmatprep.subr.bf16.mxu1 %v3050_v5 }
 0x23d   :  { %2726 = vmatmul.mubr.msk.f32.vlgmr.msra.gmra.mrb[10].mxu1 %vm1112_vm10, %v1423_v57  ;;  %v1760_v57 = vld [vmem:[#allocation2 + $0x170] sm:$0xff] }
 0x23e   :  { %2917 = vmatpush3.bf16.msra.mxu1 %v2916_v8  ;;  %2747 = vmatprep.mubr.msk.f32.mxu1 %vm3051_vm9, %v3052_v15  ;;  %v2943_v58 = vpack.c.bf16 %v1760_v57, %v1759_v56 }
 0x23f   :  { %2918 = vmatprep.subr.bf16.mxu1 %v3050_v5 }
 0x242   :  { %2920 = vmatpush3.bf16.msra.mxu1 %v2919_v11  ;;  %v2949_v11 = vpack.c.bf16 %v1919_v10, %v1918_v9 }
 0x243   :  { %2921 = vmatprep.subr.bf16.mxu1 %v3050_v5 }
 0x245   :  { %2748 = vmatmul.mubr.msk.f32.vlgmr.msra.gmra.mrb[12].mxu1 %vm1112_vm10, %v1583_v59  ;;  %v1767_v59 = vld [vmem:[#allocation2 + $0x1a8] sm:$0xff] }
 0x246   :  { %2771 = vmatprep.mubr.msk.f32.mxu1 %vm3051_vm9, %v3052_v15  ;;  %2923 = vmatpush3.bf16.msra.mxu1 %v2922_v16  ;;  %v2931_v61 = vpack.c.bf16 %v1768_v60, %v1767_v59  ;;  %v1922_v16 = vld [vmem:[#allocation2 + $0x1e8] sm:$0xff]  ;;  %v2337_v59 = vld [vmem:[#allocation2 + $0x2b0] sm:$0xff] }
 0x247   :  { %2924 = vmatprep.subr.bf16.mxu1 %v3050_v5  ;;  %v2955_v18 = vpack.c.bf16 %v1923_v17, %v1922_v16 }
 0x24a   :  { %2926 = vmatpush3.bf16.msra.mxu1 %v2925_v19 }
 0x24b   :  { %2927 = vmatprep.subr.bf16.mxu1 %v3050_v5 }
 0x24e   :  { %2929 = vmatpush3.bf16.msra.mxu1 %v2928_v55  ;;  %v2239_v55 = vld [vmem:[#allocation2 + $0x2a0] sm:$0xff] }
 0x24f   :  { %2930 = vmatprep.subr.bf16.mxu1 %v3050_v5  ;;  %v2979_v56 = vpack.c.bf16 %v2239_v55, %v2238_v54 }
 0x252   :  { %2932 = vmatpush3.bf16.msra.mxu1 %v2931_v61  ;;  %v2338_v61 = vld [vmem:[#allocation2 + $0x2b8] sm:$0xff] }
 0x253   :  { %2945 = vmatprep.subr.bf16.mxu1 %v3050_v5 }
 0x2f8   :  { %v1253_v20 = vpop.f32.mrb[4].mxu1 }
 0x2f9   :  { %v2694_v21 = vpop.f32.mrb[5].mxu1 }
 0x2fa   :  { %v2009_v21 = vld [vmem:[#allocation2 + $0x250] sm:$0xff] }
 0x2fb   :  { %v1181_v22 = vpop.f32.mrb[2].mxu0 }
 0x2fc   :  { %v1254_v23 = vadd.f32 %v1253_v20, %v1181_v22  ;;  %v2683_v24 = vpop.f32.mrb[3].mxu0  ;;  %v2008_v20 = vld [vmem:[#allocation2 + $0x248] sm:$0xff] }
 0x2fd   :  { %v2958_v22 = vpack.c.bf16 %v2009_v21, %v2008_v20  ;;  %v2159_v24 = vld [vmem:[#allocation2 + $0x270] sm:$0xff]  ;;  %v2321_v21 = vlaneseq }
 0x300   :  { %v1332_v25 = vpop.f32.mrb[6].mxu1 }
 0x301   :  { %v1336_v26 = vadd.f32 %v1332_v25, %v1254_v23  ;;  %v2705_v27 = vpop.f32.mrb[7].mxu1  ;;  %v2158_v23 = vld [vmem:[#allocation2 + $0x268] sm:$0xff] }
 0x302   :  { %v2970_v25 = vpack.c.bf16 %v2159_v24, %v2158_v23  ;;  %v2011_v27 = vld [vmem:[#allocation2 + $0x260] sm:$0xff] }
 0x303   :  { %v1572_v28 = vpop.f32.mrb[4].mxu0 }
 0x304   :  { %v2738_v29 = vpop.f32.mrb[5].mxu0 }
 0x305   :  { %v2160_v29 = vld [vmem:[#allocation2 + $0x278] sm:$0xff] }
 0x308   :  { %v1412_v30 = vpop.f32.mrb[8].mxu1 }
 0x309   :  { %v1416_v31 = vadd.f32 %v1412_v30, %v1336_v26  ;;  %v2716_v32 = vpop.f32.mrb[9].mxu1  ;;  %v2010_v26 = vld [vmem:[#allocation2 + $0x258] sm:$0xff]  ;;  %v2161_v30 = vld [vmem:[#allocation2 + $0x280] sm:$0xff] }
 0x310   :  { %v1492_v33 = vpop.f32.mrb[10].mxu1 }
 0x311   :  { %v1496_v34 = vadd.f32 %v1492_v33, %v1416_v31  ;;  %v2727_v35 = vpop.f32.mrb[11].mxu1  ;;  %v2973_v31 = vpack.c.bf16 %v2161_v30, %v2160_v29 }
 0x313   :  { %v1576_v36 = vadd.f32 %v1572_v28, %v1496_v34  ;;  %v2961_v28 = vpack.c.bf16 %v2011_v27, %v2010_v26 }
 0x318   :  { %v1652_v38 = vpop.f32.mrb[12].mxu1 }
 0x319   :  { %v1656_v39 = vadd.f32 %v1652_v38, %v1576_v36  ;;  %v2749_v40 = vpop.f32.mrb[13].mxu1 }
 0x31b   :  { %v1661_v41 = vadd.f32 %v2461_v37, %v1656_v39  ;;  %v2467_v37 = vld [vmem:[#allocation2 + $0x2ea] ss:$0 sm:$0xff] }
 0x31d   :  { %v1662_v44 = vmax.f32 %v1661_v41, 0.0 }
 0x31f   :  { %2750 = vmatprep.subr.mxu0 %v1662_v44 }
 0x320   :  { %2751 = vmatpush3.msra.mxu0 %v1662_v44 }
 0x321   :  { %2753 = vmatmul.mubr.msk.f32.vlgmr.msra.gmra.mrb[6].mxu0 %vm45_vm1, %v1664_v45  ;;  %2933 = vmatprep.subr.bf16.mxu0 %v3050_v5  ;;  %v2964_v45 = vpack.c.bf16 %v2005_v43, %v2004_v42 }
 0x322   :  { %2935 = vmatpush3.bf16.msra.mxu0 %v2934_v46  ;;  %2790 = vmatprep.mubr.msk.f32.mxu0 %vm3051_vm9, %v3052_v15 }
 0x323   :  { %2936 = vmatprep.subr.bf16.mxu0 %v3050_v5 }
 0x326   :  { %2938 = vmatpush3.bf16.msra.mxu0 %v2937_v49  ;;  %v2007_v49 = vld [vmem:[#allocation2 + $0x240] sm:$0xff] }
 0x327   :  { %2939 = vmatprep.subr.bf16.mxu0 %v3050_v5  ;;  %v2967_v50 = vpack.c.bf16 %v2007_v49, %v2006_v48 }
 0x32a   :  { %2941 = vmatpush3.bf16.msra.mxu0 %v2940_v52  ;;  %v2237_v52 = vld [vmem:[#allocation2 + $0x290] sm:$0xff] }
 0x32b   :  { %2942 = vmatprep.subr.bf16.mxu0 %v3050_v5  ;;  %v2976_v53 = vpack.c.bf16 %v2237_v52, %v2236_v51 }
 0x32e   :  { %2944 = vmatpush3.bf16.msra.mxu0 %v2943_v58  ;;  %v2336_v58 = vld [vmem:[#allocation2 + $0x2a8] sm:$0xff] }
 0x32f   :  { %2957 = vmatprep.subr.bf16.mxu0 %v3050_v5  ;;  %v2982_v60 = vpack.c.bf16 %v2337_v59, %v2336_v58 }
 0x3f4   :  { %v2754_v62 = vpop.f32.mrb[6].mxu0 }
 0x3f5   :  { %v1749_v63 = vrot.slane %v2754_v62, 6  ;;  %v1737_v0 = vpop.f32.mrb[7].mxu0  ;;  %v2339_v62 = vld [vmem:[#allocation2 + $0x2c0] sm:$0xff] }
 0x3f6   :  { %v1748_v1 = vrot.slane %v1737_v0, 6 }
 0x3f8   :  { %v1750_v4 = vsel %vm557_vm6, %v1748_v1, %v1749_v63  ;;  %v2340_v63 = vld [vmem:[#allocation2 + $0x2c8] sm:$0xff]  ;;  %v2341_v1 = vld [vmem:[#allocation2 + $0x2d0] sm:$0xff] }
 0x3f9   :  { %v1752_v6 = vmax.f32 %v1737_v0, %v1750_v4  ;;  %v2985_v0 = vpack.c.bf16 %v2339_v62, %v2338_v61  ;;  %v2988_v2 = vpack.c.bf16 %v2341_v1, %v2340_v63 }
 0x3fb   :  { %v1770_v8 = vrot.slane %v1752_v6, 1  ;;  %2791 = vmatmul.mubr.msk.f32.vlgmr.msra.gmra.mrb[8].mxu0 %vm1771_vm11, %v1752_v6  ;;  %v1924_v19 = vrot.slane %v1752_v6, 2 }
 0x3fc   :  { %2820 = vmatprep.mubr.msk.f32.mxu0 %vm3051_vm9, %v3052_v15  ;;  %2959 = vmatpush3.bf16.msra.mxu0 %v2958_v22  ;;  %v2324_v22 = vshrl.u32 %v2321_v21, 7 }
 0x3fd   :  { %2772 = vmatmul.mubr.msk.f32.vlgmr.msra.gmra.mrb[14].mxu1 %vm1771_vm11, %v1770_v8  ;;  %2960 = vmatprep.subr.bf16.mxu0 %v3050_v5 }
 0x3fe   :  { %2947 = vmatpush3.bf16.msra.mxu1 %v2946_v7  ;;  %2809 = vmatprep.mubr.msk.f32.mxu1 %vm3051_vm9, %v3052_v15  ;;  %v2327_v24 = vadd.s32 1, %v2324_v22  ;;  %v2325_v26 = vmul.u32 32, %v2324_v22 }
 0x3ff   :  { %2948 = vmatprep.subr.bf16.mxu1 %v3050_v5 }
 0x400   :  { %2962 = vmatpush3.bf16.msra.mxu0 %v2961_v28  ;;  %v2328_v27 = vmul.u32 32, %v2327_v24  ;;  %v2333_v28 = vsub.s32 0, %v2324_v22 }
 0x401   :  { %2963 = vmatprep.subr.bf16.mxu0 %v3050_v5 }
 0x402   :  { %2950 = vmatpush3.bf16.msra.mxu1 %v2949_v11 }
 0x403   :  { %2951 = vmatprep.subr.bf16.mxu1 %v3050_v5 }
 0x406   :  { %2953 = vmatpush3.bf16.msra.mxu1 %v2952_v14  ;;  %v32_v14 = vld [vmem:[#allocation2 + $0x2eb] sm:$0x1] }
 0x407   :  { %2954 = vmatprep.subr.bf16.mxu1 %v3050_v5 }
 0x40a   :  { %2956 = vmatpush3.bf16.msra.mxu1 %v2955_v18 }
 0x40b   :  { %2969 = vmatprep.subr.bf16.mxu1 %v3050_v5 }
 0x40d   :  { %2810 = vmatmul.mubr.msk.f32.vlgmr.msra.gmra.mrb[16].mxu1 %vm1771_vm11, %v1924_v19 }
 0x40e   :  { %2842 = vmatprep.mubr.msk.f32.mxu1 %vm3051_vm9, %v3052_v15  ;;  %2971 = vmatpush3.bf16.msra.mxu1 %v2970_v25  ;;  %v2322_v25 = vand.u32 127, %v2321_v21 }
 0x40f   :  { %2972 = vmatprep.subr.bf16.mxu1 %v3050_v5 }
 0x410   :  { %vm2326_vm12 = vcmp.ge.s32.totalorder %v2322_v25, %v2325_v26  ;;  %vm2329_vm13 = vcmp.lt.s32.totalorder %v2322_v25, %v2328_v27 }
 0x411   :  { %vm2330_vm14 = vmand %vm2326_vm12, %vm2329_vm13 }
 0x412   :  { %2974 = vmatpush3.bf16.msra.mxu1 %v2973_v31 }
 0x413   :  { %2981 = vmatprep.subr.bf16.mxu1 %v3050_v5 }
 0x4ce   :  { %v1912_v32 = vpop.f32.mrb[8].mxu0 }
 0x4cf   :  { %v2792_v33 = vpop.f32.mrb[9].mxu0 }
 0x4d0   :  { %v1840_v34 = vpop.f32.mrb[14].mxu1 }
 0x4d1   :  { %v1913_v35 = vadd.f32 %v1912_v32, %v1840_v34  ;;  %v2773_v36 = vpop.f32.mrb[15].mxu1  ;;  %v2473_v32 = vld [vmem:[#allocation2 + $0x2ec] ss:$0 sm:$0xff] }
 0x4e0   :  { %v1993_v38 = vpop.f32.mrb[16].mxu1 }
 0x4e1   :  { %v1997_v39 = vadd.f32 %v1993_v38, %v1913_v35  ;;  %v2811_v40 = vpop.f32.mrb[17].mxu1 }
 0x4e3   :  { %v2002_v41 = vadd.f32 %v2467_v37, %v1997_v39 }
 0x4e5   :  { %v2003_v44 = vmax.f32 %v2002_v41, 0.0 }
 0x4e7   :  { %v2013_v46 = vrot.slane %v2003_v44, 1  ;;  %v2162_v47 = vrot.slane %v2003_v44, 2  ;;  %v2240_v57 = vrot.slane %v2003_v44, 3 }
 0x4e9   :  { %2821 = vmatmul.mubr.msk.f32.vlgmr.msra.gmra.mrb[10].mxu0 %vm1112_vm10, %v2013_v46  ;;  %2843 = vmatmul.mubr.msk.f32.vlgmr.msra.gmra.mrb[18].mxu1 %vm1112_vm10, %v2162_v47 }
 0x4ea   :  { %2965 = vmatpush3.bf16.msra.mxu0 %v2964_v45  ;;  %2831 = vmatprep.mubr.msk.f32.mxu0 %vm3051_vm9, %v3052_v15 }
 0x4eb   :  { %2966 = vmatprep.subr.bf16.mxu0 %v3050_v5  ;;  %2872 = vmatprep.mubr.msk.f32.mxu1 %vm3051_vm9, %v3052_v15 }
 0x4ec   :  { %2983 = vmatpush3.bf16.msra.mxu1 %v2982_v60 }
 0x4ed   :  { %2984 = vmatprep.subr.bf16.mxu1 %v3050_v5 }
 0x4ee   :  { %2968 = vmatpush3.bf16.msra.mxu0 %v2967_v50 }
 0x4ef   :  { %2975 = vmatprep.subr.bf16.mxu0 %v3050_v5 }
 0x4f0   :  { %2986 = vmatpush3.bf16.msra.mxu1 %v2985_v0 }
 0x4f1   :  { %2832 = vmatmul.mubr.msk.f32.vlgmr.msra.gmra.mrb[12].mxu0 %vm1112_vm10, %v2003_v44  ;;  %2987 = vmatprep.subr.bf16.mxu1 %v3050_v5 }
 0x4f2   :  { %2977 = vmatpush3.bf16.msra.mxu0 %v2976_v53  ;;  %2853 = vmatprep.mubr.msk.f32.mxu0 %vm3051_vm9, %v3052_v15  ;;  %v2342_v15 = vld [vmem:[#allocation2 + $0x2d8] sm:$0xff] }
 0x4f3   :  { %2978 = vmatprep.subr.bf16.mxu0 %v3050_v5  ;;  %v2991_v4 = vpack.c.bf16 %v2343_v3, %v2342_v15 }
 0x4f4   :  { %2989 = vmatpush3.bf16.msra.mxu1 %v2988_v2 }
 0x4f5   :  { %2990 = vmatprep.subr.bf16.mxu1 %v3050_v5 }
 0x4f6   :  { %2980 = vmatpush3.bf16.msra.mxu0 %v2979_v56 }
 0x4f8   :  { %2992 = vmatpush3.bf16.msra.mxu1 %v2991_v4 }
 0x4f9   :  { %2854 = vmatmul.mubr.msk.f32.vlgmr.msra.gmra.mrb[14].mxu0 %vm1112_vm10, %v2240_v57 }
 0x5bc   :  { %v2082_v6 = vpop.f32.mrb[10].mxu0  ;;  %v2231_v7 = vpop.f32.mrb[18].mxu1 }
 0x5bd   :  { %v2822_v8 = vpop.f32.mrb[11].mxu0  ;;  %v2844_v9 = vpop.f32.mrb[19].mxu1 }
 0x5c4   :  { %v2154_v10 = vpop.f32.mrb[12].mxu0 }
 0x5c5   :  { %v2155_v11 = vadd.f32 %v2154_v10, %v2082_v6  ;;  %v2833_v12 = vpop.f32.mrb[13].mxu0 }
 0x5c7   :  { %v2235_v13 = vadd.f32 %v2231_v7, %v2155_v11 }
 0x5cc   :  { %v2309_v16 = vpop.f32.mrb[14].mxu0 }
 0x5cd   :  { %v2313_v17 = vadd.f32 %v2309_v16, %v2235_v13  ;;  %v2855_v18 = vpop.f32.mrb[15].mxu0 }
 0x5cf   :  { %v2314_v19 = vadd.f32 %v2313_v17, %v32_v14 }
 0x5d1   :  { %v2472_v20 = vmul.f32 -1.442695, %v2314_v19 }
 0x5d3   :  { %3019 = vpow2.f32 %v2472_v20 }
 0x5dd   :  { %v3020_v23 = vpop.eup %3019 }
 0x5de   :  { %v2318_v5 = vadd.f32 1.0, %v3020_v23 }
 0x5e0   :  { %3021 = vrcp.f32 %v2318_v5 }
 0x5ea   :  { %v3022_v29 = vpop.eup %3021 }
 0x5eb   :  { %v2334_v30 = vrot.slane %v3022_v29, %v2333_v28 }
 0x5ed   :  { %v2335_v31 = vsel %vm2330_vm14, %v2334_v30, 0.0 }
 0x5ee   :  { %2873 = vmatmul.mubr.msk.f32.vlgmr.msra.gmra.mrb[20].mxu1 %vm1771_vm11, %v2335_v31 }
 0x6c1   :  { %v2417_v33 = vpop.f32.mrb[20].mxu1 }
 0x6c2   :  { %v2418_v34 = vadd.f32 %v2473_v32, %v2417_v33  ;;  %v2874_v35 = vpop.f32.mrb[21].mxu1 }
 0x6c4   :  { %2421 = vst [vmem:[%s3278_s2] sm:$0x3] %v2418_v34 }
 0x6c5   :  { %2426 = vsyncpa [#allocation3], 1 }

</bundles_post_ra>
